<compile_context>
chip_gen: v7x
topology: tpu7x:2x2x1
jax: 0.10.0
libtpu: 0.0.40
codegen_flags: <defaults>
</compile_context>

<pallas_src>
import functools

import jax
import jax.numpy as jnp
import numpy as np
from jax.experimental import pallas as pl
from jax.experimental.pallas import tpu as pltpu

INPUT_SIZE = 28 * 28      # 784
HIDDEN1 = 256
HIDDEN2 = 128
OUTPUT_SIZE = 10
OUT_PAD = 128             # lane-dense padded output width


def _round_up(x, m):
    return ((x + m - 1) // m) * m


def mlp_kernel(x_ref, w1_ref, b1_ref, w2_ref, b2_ref, w3_ref, b3_ref, o_ref):
    # x_ref: (TB, 784) bf16; weights bf16, biases f32; o_ref: (TB, 128) f32.
    x = x_ref[...]

    # linear1 + relu  (bf16 MXU matmul, f32 accumulation)
    h1 = jnp.dot(x, w1_ref[...], preferred_element_type=jnp.float32) + b1_ref[...]
    h1 = jnp.maximum(h1, 0.0).astype(jnp.bfloat16)

    # linear2 + relu
    h2 = jnp.dot(h1, w2_ref[...], preferred_element_type=jnp.float32) + b2_ref[...]
    h2 = jnp.maximum(h2, 0.0).astype(jnp.bfloat16)

    # linear3 (padded logits, no activation) -- lane-dense 128-wide store
    o_ref[...] = jnp.dot(h2, w3_ref[...], preferred_element_type=jnp.float32) + b3_ref[...]


def prepare_params(params):
    """One-time prep: cast weights to bf16, pad layer 3 to 128 output lanes."""
    w1, b1, w2, b2, w3, b3 = params
    w1b = w1.astype(jnp.bfloat16)
    w2b = w2.astype(jnp.bfloat16)
    w3p = jnp.pad(w3, ((0, 0), (0, OUT_PAD - OUTPUT_SIZE))).astype(jnp.bfloat16)
    b3p = jnp.pad(b3, ((0, 0), (0, OUT_PAD - OUTPUT_SIZE))).astype(jnp.float32)
    return (w1b, b1.astype(jnp.float32), w2b, b2.astype(jnp.float32), w3p, b3p)


@functools.partial(jax.jit, static_argnames=("tb",))
def mnist_model_forward(batch_nchw, prepared_params, tb=None):
    """batch_nchw: (B, 1, 28, 28) -> logits (B, 10) float32."""
    w1b, b1, w2b, b2, w3p, b3p = prepared_params
    B = batch_nchw.shape[0]
    x = batch_nchw.reshape(B, -1).astype(jnp.bfloat16)   # == batch.view(batch.size(0), -1)

    # Batch tile: multiple of 8 sublanes; cap at 256 (fills MXU, keeps intermediates
    # small enough for v7x's 64 MiB VMEM / v5e's 16 MiB scoped default).
    if tb is None:
        tb = min(256, _round_up(B, 8))
    B_pad = _round_up(B, tb)
    if B_pad != B:
        x = jnp.pad(x, ((0, B_pad - B), (0, 0)))

    grid = (pl.cdiv(B_pad, tb),)

    out_padded = pl.pallas_call(
        mlp_kernel,
        out_shape=jax.ShapeDtypeStruct((B_pad, OUT_PAD), jnp.float32),
        grid=grid,
        in_specs=[
            pl.BlockSpec((tb, INPUT_SIZE), lambda i: (i, 0)),          # x: streamed per tile
            pl.BlockSpec((INPUT_SIZE, HIDDEN1), lambda i: (0, 0)),     # W1: resident
            pl.BlockSpec((1, HIDDEN1), lambda i: (0, 0)),              # b1: resident
            pl.BlockSpec((HIDDEN1, HIDDEN2), lambda i: (0, 0)),        # W2: resident
            pl.BlockSpec((1, HIDDEN2), lambda i: (0, 0)),              # b2: resident
            pl.BlockSpec((HIDDEN2, OUT_PAD), lambda i: (0, 0)),        # W3 (padded): resident
            pl.BlockSpec((1, OUT_PAD), lambda i: (0, 0)),              # b3 (padded): resident
        ],
        out_specs=pl.BlockSpec((tb, OUT_PAD), lambda i: (i, 0)),
        compiler_params=pltpu.CompilerParams(
            dimension_semantics=("parallel",),                         # megacore on v7x
        ),
    )(x, w1b, b1, w2b, b2, w3p, b3p)

    return out_padded[:B, :OUTPUT_SIZE]


def init_params(key):
    """Deterministic init mimicking nn.Linear default (uniform +/- 1/sqrt(fan_in)).
    Weights stored transposed relative to torch: shape (in, out). Biases as (1, out)."""
    dims = [(INPUT_SIZE, HIDDEN1), (HIDDEN1, HIDDEN2), (HIDDEN2, OUTPUT_SIZE)]
    params = []
    for (fan_in, fan_out) in dims:
        key, kw, kb = jax.random.split(key, 3)
        bound = 1.0 / np.sqrt(fan_in)
        w = jax.random.uniform(kw, (fan_in, fan_out), jnp.float32, -bound, bound)
        b = jax.random.uniform(kb, (1, fan_out), jnp.float32, -bound, bound)
        params += [w, b]
    return tuple(params)


def reference_forward(batch_nchw, params):
    """Pure-JAX f32 reference for correctness check (matches the torch module)."""
    w1, b1, w2, b2, w3, b3 = params
    x = batch_nchw.reshape(batch_nchw.shape[0], -1).astype(jnp.float32)
    h1 = jnp.maximum(x @ w1 + b1, 0.0)
    h2 = jnp.maximum(h1 @ w2 + b2, 0.0)
    return h2 @ w3 + b3


if __name__ == "__main__":
    key = jax.random.PRNGKey(0)
    key, kx = jax.random.split(key)

    B = 16  # small batch; tb=8 below exercises a 2-step pipelined grid
    batch = jax.random.normal(kx, (B, 1, 28, 28), jnp.float32)  # NCHW like PyTorch MNIST
    params = init_params(key)
    prepared = prepare_params(params)

    out = mnist_model_forward(batch, prepared, tb=8)
    out = jax.block_until_ready(out)

    ref = reference_forward(batch, params)
    # bf16 inputs/weights with f32 accumulation: relaxed tolerance vs the f32 reference.
    np.testing.assert_allclose(np.asarray(out), np.asarray(ref), rtol=2e-2, atol=2e-2)
    assert out.shape == (B, OUTPUT_SIZE) and out.dtype == jnp.float32

    print("KERNEL_OK")
</pallas_src>

<mosaic_0001>
module attributes {stable_mosaic.version = 11 : i64} {
  func.func @mlp_kernel(%arg0: i32, %arg1: memref<8x784xbf16, #tpu.memory_space<vmem>>, %arg2: memref<784x256xbf16, #tpu.memory_space<vmem>>, %arg3: memref<1x256xf32, #tpu.memory_space<vmem>>, %arg4: memref<256x128xbf16, #tpu.memory_space<vmem>>, %arg5: memref<1x128xf32, #tpu.memory_space<vmem>>, %arg6: memref<128x128xbf16, #tpu.memory_space<vmem>>, %arg7: memref<1x128xf32, #tpu.memory_space<vmem>>, %arg8: memref<8x128xf32, #tpu.memory_space<vmem>>) attributes {dimension_semantics = [#tpu.dimension_semantics<parallel>], iteration_bounds = array<i64: 2>, scalar_prefetch = 0 : i64, scratch_operands = 0 : i64, tpu.core_type = #tpu.core_type<tc>, window_params = [{transform_indices = @transform_0, window_bounds = array<i64: 8, 784>}, {pipeline_mode = #tpu.pipeline_mode<synchronous>, transform_indices = @transform_1, window_bounds = array<i64: 784, 256>}, {pipeline_mode = #tpu.pipeline_mode<synchronous>, transform_indices = @transform_2, window_bounds = array<i64: 1, 256>}, {pipeline_mode = #tpu.pipeline_mode<synchronous>, transform_indices = @transform_3, window_bounds = array<i64: 256, 128>}, {pipeline_mode = #tpu.pipeline_mode<synchronous>, transform_indices = @transform_4, window_bounds = array<i64: 1, 128>}, {pipeline_mode = #tpu.pipeline_mode<synchronous>, transform_indices = @transform_5, window_bounds = array<i64: 128, 128>}, {pipeline_mode = #tpu.pipeline_mode<synchronous>, transform_indices = @transform_6, window_bounds = array<i64: 1, 128>}, {transform_indices = @transform_7, window_bounds = array<i64: 8, 128>}]} {
    %c0 = arith.constant 0 : index
    %c0_0 = arith.constant 0 : index
    %0 = vector.load %arg1[%c0, %c0_0] : memref<8x784xbf16, #tpu.memory_space<vmem>>, vector<8x784xbf16>
    %c0_1 = arith.constant 0 : index
    %c0_2 = arith.constant 0 : index
    %1 = vector.load %arg2[%c0_1, %c0_2] : memref<784x256xbf16, #tpu.memory_space<vmem>>, vector<784x256xbf16>
    %cst = arith.constant dense<0.000000e+00> : vector<8x256xf32>
    %2 = tpu.matmul %0, %1, %cst {dimension_numbers = #tpu.dot_dimension_numbers<[1], [0], [0], [1], [0, 0, 1, 1], [], []>} : vector<8x784xbf16>, vector<784x256xbf16>, vector<8x256xf32> -> vector<8x256xf32>
    %c0_3 = arith.constant 0 : index
    %c0_4 = arith.constant 0 : index
    %3 = vector.load %arg3[%c0_3, %c0_4] : memref<1x256xf32, #tpu.memory_space<vmem>>, vector<1x256xf32>
    %4 = vector.broadcast %3 : vector<1x256xf32> to vector<8x256xf32>
    %5 = arith.addf %2, %4 : vector<8x256xf32>
    %cst_5 = arith.constant 0.000000e+00 : f32
    %6 = vector.broadcast %cst_5 : f32 to vector<8x256xf32>
    %7 = arith.maximumf %5, %6 : vector<8x256xf32>
    %8 = arith.truncf %7 : vector<8x256xf32> to vector<8x256xbf16>
    %c0_6 = arith.constant 0 : index
    %c0_7 = arith.constant 0 : index
    %9 = vector.load %arg4[%c0_6, %c0_7] : memref<256x128xbf16, #tpu.memory_space<vmem>>, vector<256x128xbf16>
    %cst_8 = arith.constant dense<0.000000e+00> : vector<8x128xf32>
    %10 = tpu.matmul %8, %9, %cst_8 {dimension_numbers = #tpu.dot_dimension_numbers<[1], [0], [0], [1], [0, 0, 1, 1], [], []>} : vector<8x256xbf16>, vector<256x128xbf16>, vector<8x128xf32> -> vector<8x128xf32>
    %c0_9 = arith.constant 0 : index
    %c0_10 = arith.constant 0 : index
    %11 = vector.load %arg5[%c0_9, %c0_10] : memref<1x128xf32, #tpu.memory_space<vmem>>, vector<1x128xf32>
    %12 = vector.broadcast %11 : vector<1x128xf32> to vector<8x128xf32>
    %13 = arith.addf %10, %12 : vector<8x128xf32>
    %cst_11 = arith.constant 0.000000e+00 : f32
    %14 = vector.broadcast %cst_11 : f32 to vector<8x128xf32>
    %15 = arith.maximumf %13, %14 : vector<8x128xf32>
    %16 = arith.truncf %15 : vector<8x128xf32> to vector<8x128xbf16>
    %c0_12 = arith.constant 0 : index
    %c0_13 = arith.constant 0 : index
    %17 = vector.load %arg6[%c0_12, %c0_13] : memref<128x128xbf16, #tpu.memory_space<vmem>>, vector<128x128xbf16>
    %cst_14 = arith.constant dense<0.000000e+00> : vector<8x128xf32>
    %18 = tpu.matmul %16, %17, %cst_14 {dimension_numbers = #tpu.dot_dimension_numbers<[1], [0], [0], [1], [0, 0, 1, 1], [], []>} : vector<8x128xbf16>, vector<128x128xbf16>, vector<8x128xf32> -> vector<8x128xf32>
    %c0_15 = arith.constant 0 : index
    %c0_16 = arith.constant 0 : index
    %19 = vector.load %arg7[%c0_15, %c0_16] : memref<1x128xf32, #tpu.memory_space<vmem>>, vector<1x128xf32>
    %20 = vector.broadcast %19 : vector<1x128xf32> to vector<8x128xf32>
    %21 = arith.addf %18, %20 : vector<8x128xf32>
    %c0_17 = arith.constant 0 : index
    %c0_18 = arith.constant 0 : index
    %22 = vector.load %arg8[%c0_17, %c0_18] : memref<8x128xf32, #tpu.memory_space<vmem>>, vector<8x128xf32>
    tpu.vector_store %arg8[%c0_17, %c0_18], %21 {strides = array<i32>} : memref<8x128xf32, #tpu.memory_space<vmem>>, vector<8x128xf32>,
    return
  }
  func.func @transform_0(%arg0: i32) -> (i32, i32) {
    %c0_i32 = arith.constant 0 : i32
    %c0_i32_0 = arith.constant 0 : i32
    return %arg0, %c0_i32 : i32, i32
  }
  func.func @transform_1(%arg0: i32) -> (i32, i32) {
    %c0_i32 = arith.constant 0 : i32
    %c0_i32_0 = arith.constant 0 : i32
    %c0_i32_1 = arith.constant 0 : i32
    return %c0_i32, %c0_i32_0 : i32, i32
  }
  func.func @transform_2(%arg0: i32) -> (i32, i32) {
    %c0_i32 = arith.constant 0 : i32
    %c0_i32_0 = arith.constant 0 : i32
    %c0_i32_1 = arith.constant 0 : i32
    return %c0_i32, %c0_i32_0 : i32, i32
  }
  func.func @transform_3(%arg0: i32) -> (i32, i32) {
    %c0_i32 = arith.constant 0 : i32
    %c0_i32_0 = arith.constant 0 : i32
    %c0_i32_1 = arith.constant 0 : i32
    return %c0_i32, %c0_i32_0 : i32, i32
  }
  func.func @transform_4(%arg0: i32) -> (i32, i32) {
    %c0_i32 = arith.constant 0 : i32
    %c0_i32_0 = arith.constant 0 : i32
    %c0_i32_1 = arith.constant 0 : i32
    return %c0_i32, %c0_i32_0 : i32, i32
  }
  func.func @transform_5(%arg0: i32) -> (i32, i32) {
    %c0_i32 = arith.constant 0 : i32
    %c0_i32_0 = arith.constant 0 : i32
    %c0_i32_1 = arith.constant 0 : i32
    return %c0_i32, %c0_i32_0 : i32, i32
  }
  func.func @transform_6(%arg0: i32) -> (i32, i32) {
    %c0_i32 = arith.constant 0 : i32
    %c0_i32_0 = arith.constant 0 : i32
    %c0_i32_1 = arith.constant 0 : i32
    return %c0_i32, %c0_i32_0 : i32, i32
  }
  func.func @transform_7(%arg0: i32) -> (i32, i32) {
    %c0_i32 = arith.constant 0 : i32
    %c0_i32_0 = arith.constant 0 : i32
    return %arg0, %c0_i32 : i32, i32
  }
}

</mosaic_0001>

<bundles_post_ra>
// kernel: mnist_model_forward.1
= control target key start
LH: loop header
LB: loop body
LE: loop exit
PB: predicated region body
PF: predicated region fallthrough
CT: control target
= control target key end

     0   :  { %12 = vsyncpa [#allocation3], 0  ;;  %s2467_s0 = inlined_call_operand.vmem [shape: bf16[16,784], index: 0, kind: input, shape index: {}]   ;;  %s2468_s1 = inlined_call_operand.vmem [shape: bf16[784,256], index: 1, kind: input, shape index: {}]   ;;  %s2469_s2 = inlined_call_operand.vmem [shape: f32[1,256], index: 2, kind: input, shape index: {}]   ;;  %s2470_s3 = inlined_call_operand.vmem [shape: bf16[256,128], index: 3, kind: input, shape index: {}]   ;;  %s2471_s4 = inlined_call_operand.vmem [shape: f32[1,128], index: 4, kind: input, shape index: {}]   ;;  %s2472_s5 = inlined_call_operand.vmem [shape: bf16[128,128], index: 5, kind: input, shape index: {}]   ;;  %s2473_s6 = inlined_call_operand.vmem [shape: f32[1,128], index: 6, kind: input, shape index: {}]   ;;  %s2474_s7 = inlined_call_operand.hbm [shape: f32[16,128], index: 7, kind: output, shape index: {}]  }
   0x1   :  { %14 = vsyncpa [#allocation3 + $0x1], 0  ;;  %s1974_s24 = smov 0   ;;  %s1976_s25 = smov 0  }
   0x2   :  { %s1978_s26 = smov 0   ;;  %s1980_s27 = smov 0  }
   0x3 LB: > { %s1995_s28 = sadd.s32 4294967295, %s1928_s27   ;;  %s1440_s29 = sadd.s32 4294967294, %s1928_s27   ;;  %s1928_s27 = sphi %s1980_s27, %s2480_s27   ;;  %s1924_s26 = sphi %s1978_s26, %s2479_s26   ;;  %s1920_s25 = sphi %s1976_s25, %s2478_s25   ;;  %s1916_s24 = sphi %s1974_s24, %s2477_s24  }
   0x4   : > { %s1999_s30 = sadd.s32 1, %s1928_s27   ;;  %s179_s8 = sadd.s32 1, %s1924_s26 }
   0x5   : > { %s176_s9 = ssub.s32 %s1928_s27, %s1999_s30  ;;  %p189_p0 = scmp.ne.s32.totalorder %s1924_s26, %s1920_s25 }
   0x6   : > { %p177_p1 = scmp.eq.s32.totalorder %s176_s9, 0  ;;  %p190_p2 = scmp.eq.s32.totalorder %s1995_s28, 1 }
   0x7   : > { %p195_p3 = scmp.ne.s32.totalorder %s1920_s25, %s1916_s24  ;;  %p196_p4 = scmp.eq.s32.totalorder %s1440_s29, 1 }
   0x8   : > { %s2010_s10 = scalar_select %p177_p1, %s1924_s26, %s179_s8  }
   0x9   : > { %p2012_p5 = por %p190_p2, %p189_p0  ;;  %p2016_p6 = por %p196_p4, %p195_p3 }
   0xa   : > { %p1443_p7 = scmp.ge.s32.totalorder %s1928_s27, 1  ;;  %p240_p8 = scmp.lt.s32.totalorder %s1928_s27, 3 }
   0xc   : > { %p241_p9 = pnand %p1443_p7, %p240_p8 }
   0xd   : > { %v1688_v0 = vld [vmem:[%s2468_s1 + $0x104] ss:$8 sps:$4 sm:$0xff] (!%p241_p9)   ;;  %v1690_v1 = vld [vmem:[%s2468_s1 + $0x100] ss:$8 sps:$4 sm:$0xff] (!%p241_p9)   ;;  %v1691_v2 = vld [vmem:[%s2468_s1 + $0x114] ss:$8 sps:$4 sm:$0xff] (!%p241_p9)  }
   0xe   : > { %244 = sbr.rel (%p241_p9) target bundleno = 823 (0x337), region = 48  ;;  %951 = vmatprep.subr.bf16.mxu0 (!%p241_p9), %v1688_v0  ;;  %v1693_v3 = vld [vmem:[%s2468_s1 + $0x110] ss:$8 sps:$4 sm:$0xff] (!%p241_p9)   ;;  %v1694_v4 = vld [vmem:[%s2468_s1 + $0x124] ss:$8 sps:$4 sm:$0xff] (!%p241_p9)   ;;  %p272_p10 = scmp.lt.s32.totalorder (!%p241_p9), %s1995_s28, 1 }
   0xf   : > { %952 = vmatpush1.bf16.msra.mxu0 (!%p241_p9), %v1690_v1  ;;  %v1696_v5 = vld [vmem:[%s2468_s1 + $0x120] ss:$8 sps:$4 sm:$0xff] (!%p241_p9)   ;;  %v1697_v6 = vld [vmem:[%s2468_s1 + $0x134] ss:$8 sps:$4 sm:$0xff] (!%p241_p9)   ;;  %v1699_v7 = vld [vmem:[%s2468_s1 + $0x130] ss:$8 sps:$4 sm:$0xff] (!%p241_p9)  }
  0x10   : > { %953 = vmatprep.subr.bf16.mxu0 (!%p241_p9), %v1691_v2  ;;  %v1700_v8 = vld [vmem:[%s2468_s1 + $0x144] ss:$8 sps:$4 sm:$0xff] (!%p241_p9)   ;;  %v1702_v9 = vld [vmem:[%s2468_s1 + $0x140] ss:$8 sps:$4 sm:$0xff] (!%p241_p9)   ;;  %v1703_v10 = vld [vmem:[%s2468_s1 + $0x154] ss:$8 sps:$4 sm:$0xff] (!%p241_p9)  }
  0x11   : > { %v1705_v11 = vld [vmem:[%s2468_s1 + $0x150] ss:$8 sps:$4 sm:$0xff] (!%p241_p9)   ;;  %v1706_v12 = vld [vmem:[%s2468_s1 + $0x164] ss:$8 sps:$4 sm:$0xff] (!%p241_p9)   ;;  %v1708_v15 = vld [vmem:[%s2468_s1 + $0x160] ss:$8 sps:$4 sm:$0xff] (!%p241_p9)  }
  0x12   : > { %v1709_v16 = vld [vmem:[%s2468_s1 + $0x174] ss:$8 sps:$4 sm:$0xff] (!%p241_p9)   ;;  %v1745_v17 = vld [vmem:[%s2468_s1 + $0x4] ss:$8 sps:$4 sm:$0xff] (!%p241_p9)   ;;  %v1711_v18 = vld [vmem:[%s2468_s1 + $0x170] ss:$8 sps:$4 sm:$0xff] (!%p241_p9)  }
  0x13   : > { %954 = vmatpush1.bf16.msra.mxu0 (!%p241_p9), %v1693_v3  ;;  %v1712_v19 = vld [vmem:[%s2468_s1 + $0x184] ss:$8 sps:$4 sm:$0xff] (!%p241_p9)   ;;  %910 = vmatprep.subr.bf16.mxu1 (!%p241_p9), %v1745_v17  ;;  %v1750_v20 = vld [vmem:[%s2468_s1] ss:$8 sps:$4 sm:$0xff] (!%p241_p9)   ;;  %v1751_v21 = vld [vmem:[%s2468_s1 + $0x14] ss:$8 sps:$4 sm:$0xff] (!%p241_p9)  }
  0x14   : > { %955 = vmatprep.subr.bf16.mxu0 (!%p241_p9), %v1694_v4  ;;  %v1714_v22 = vld [vmem:[%s2468_s1 + $0x180] ss:$8 sps:$4 sm:$0xff] (!%p241_p9)   ;;  %911 = vmatpush1.bf16.msra.mxu1 (!%p241_p9), %v1750_v20  ;;  %v1756_v23 = vld [vmem:[%s2468_s1 + $0x10] ss:$8 sps:$4 sm:$0xff] (!%p241_p9)   ;;  %v1757_v24 = vld [vmem:[%s2468_s1 + $0x24] ss:$8 sps:$4 sm:$0xff] (!%p241_p9)  }
  0x15   : > { %s273_s13 = scalar_select %p272_p10, %s1995_s28, 1  ;;  %912 = vmatprep.subr.bf16.mxu1 %v1751_v21  ;;  %v1715_v25 = vld [vmem:[%s2468_s1 + $0x194] ss:$8 sps:$4 sm:$0xff]   ;;  %v1762_v26 = vld [vmem:[%s2468_s1 + $0x20] ss:$8 sps:$4 sm:$0xff]   ;;  %vm906_vm0 = vcmask 130048  }
  0x16   : > { %v1763_v27 = vld [vmem:[%s2468_s1 + $0x34] ss:$8 sps:$4 sm:$0xff]   ;;  %v1717_v28 = vld [vmem:[%s2468_s1 + $0x190] ss:$8 sps:$4 sm:$0xff]   ;;  %v1718_v29 = vld [vmem:[%s2468_s1 + $0x1a4] ss:$8 sps:$4 sm:$0xff]  }
  0x17   : > { %956 = vmatpush1.bf16.msra.mxu0 %v1696_v5  ;;  %s1645_s18 = smul.u32 28, %s273_s13  ;;  %v1768_v30 = vld [vmem:[%s2468_s1 + $0x30] ss:$8 sps:$4 sm:$0xff]   ;;  %v1769_v31 = vld [vmem:[%s2468_s1 + $0x44] ss:$8 sps:$4 sm:$0xff]   ;;  %vm1932_vm1 = vmmov 0  }
  0x18   : > { %957 = vmatprep.subr.bf16.mxu0 %v1697_v6  ;;  %913 = vmatpush1.bf16.msra.mxu1 %v1756_v23  ;;  %v1720_v32 = vld [vmem:[%s2468_s1 + $0x1a0] ss:$8 sps:$4 sm:$0xff]   ;;  %v1721_v33 = vld [vmem:[%s2468_s1 + $0x1b4] ss:$8 sps:$4 sm:$0xff]   ;;  %v1723_v36 = vld [vmem:[%s2468_s1 + $0x1b0] ss:$8 sps:$4 sm:$0xff]  }
  0x19   : > { %s2060_s8 = scalar_lea.vmem %s2467_s0, %s1645_s18  ;;  %914 = vmatprep.subr.bf16.mxu1 %v1757_v24  ;;  %v1774_v34 = vld [vmem:[%s2468_s1 + $0x40] ss:$8 sps:$4 sm:$0xff]   ;;  %v1775_v35 = vld [vmem:[%s2468_s1 + $0x54] ss:$8 sps:$4 sm:$0xff]   ;;  %v1724_v37 = vld [vmem:[%s2468_s1 + $0x1c4] ss:$8 sps:$4 sm:$0xff]  }
  0x1a   : > { %v2069_v13 = vld [vmem:[%s2060_s8 + $0x8] sm:$0xff]  ;;  %v1780_v38 = vld [vmem:[%s2468_s1 + $0x50] ss:$8 sps:$4 sm:$0xff]   ;;  %v1727_v41 = vld [vmem:[%s2468_s1 + $0x1d4] ss:$8 sps:$4 sm:$0xff]   ;;  %s269_s15 = sand.u32 1, %s1920_s25  }
  0x1b   : > { %958 = vmatpush1.bf16.msra.mxu0 %v1699_v7  ;;  %v1449_v14 = vcombine.high %v2069_v13, %v2069_v13  ;;  %v1781_v39 = vld [vmem:[%s2468_s1 + $0x64] ss:$8 sps:$4 sm:$0xff]   ;;  %v1726_v40 = vld [vmem:[%s2468_s1 + $0x1c0] ss:$8 sps:$4 sm:$0xff]   ;;  %v1787_v43 = vld [vmem:[%s2468_s1 + $0x74] ss:$8 sps:$4 sm:$0xff]   ;;  %v1448_v55 = vcombine.low %v2069_v13, %v2069_v13 }
  0x1c   : > { %959 = vmatprep.subr.bf16.mxu0 %v1700_v8  ;;  %915 = vmatpush1.bf16.msra.mxu1 %v1762_v26  ;;  %v1786_v42 = vld [vmem:[%s2468_s1 + $0x60] ss:$8 sps:$4 sm:$0xff]   ;;  %v1729_v44 = vld [vmem:[%s2468_s1 + $0x1d0] ss:$8 sps:$4 sm:$0xff]   ;;  %v1730_v45 = vld [vmem:[%s2468_s1 + $0x1e4] ss:$8 sps:$4 sm:$0xff]  }
  0x1d   : > { %983 = vmatprep.mubr.bf16.mxu0 %v1449_v14  ;;  %916 = vmatprep.subr.bf16.mxu1 %v1763_v27  ;;  %v1792_v46 = vld [vmem:[%s2468_s1 + $0x70] ss:$8 sps:$4 sm:$0xff]   ;;  %v1793_v47 = vld [vmem:[%s2468_s1 + $0x84] ss:$8 sps:$4 sm:$0xff]   ;;  %v1732_v48 = vld [vmem:[%s2468_s1 + $0x1e0] ss:$8 sps:$4 sm:$0xff]  }
  0x1e   : > { %v1733_v49 = vld [vmem:[%s2468_s1 + $0x1f4] ss:$8 sps:$4 sm:$0xff]   ;;  %v1798_v50 = vld [vmem:[%s2468_s1 + $0x80] ss:$8 sps:$4 sm:$0xff]   ;;  %v1735_v52 = vld [vmem:[%s2468_s1 + $0x1f0] ss:$8 sps:$4 sm:$0xff]  }
  0x1f   : > { %960 = vmatpush1.bf16.msra.mxu0 %v1702_v9  ;;  %v1799_v51 = vld [vmem:[%s2468_s1 + $0x94] ss:$8 sps:$4 sm:$0xff]   ;;  %v1741_v53 = vld [vmem:[%s2468_s1 + $0x204] ss:$8 sps:$4 sm:$0xff]   ;;  %v1804_v54 = vld [vmem:[%s2468_s1 + $0x90] ss:$8 sps:$4 sm:$0xff]  }
  0x20   : > { %961 = vmatprep.subr.bf16.mxu0 %v1703_v10  ;;  %917 = vmatpush1.bf16.msra.mxu1 %v1768_v30  ;;  %v1805_v56 = vld [vmem:[%s2468_s1 + $0xa4] ss:$8 sps:$4 sm:$0xff]   ;;  %v2199_v57 = vld [vmem:[%s2060_s8 + $0x10] sm:$0xff]  ;;  %v1739_v58 = vld [vmem:[%s2468_s1 + $0x200] ss:$8 sps:$4 sm:$0xff]   ;;  %s1444_s16 = sshll.u32 %s269_s15, 3 }
  0x21   : > { %918 = vmatprep.subr.bf16.mxu1 %v1769_v31  ;;  %v1451_v59 = vcombine.high %v2199_v57, %v2199_v57  ;;  %v1744_v60 = vld [vmem:[%s2468_s1 + $0x214] ss:$8 sps:$4 sm:$0xff]   ;;  %v1810_v61 = vld [vmem:[%s2468_s1 + $0xa0] ss:$8 sps:$4 sm:$0xff]   ;;  %v1742_v0 = vld [vmem:[%s2468_s1 + $0x210] ss:$8 sps:$4 sm:$0xff]  }
  0x22   : > { %v1811_v62 = vld [vmem:[%s2468_s1 + $0xb4] ss:$8 sps:$4 sm:$0xff]   ;;  %v278_v63 = vld [vmem:[%s2060_s8] sm:$0xff]  ;;  %v1816_v3 = vld [vmem:[%s2468_s1 + $0xb0] ss:$8 sps:$4 sm:$0xff]   ;;  %s271_s19 = scalar_lea.vmem [#allocation2], %s1444_s16 }
  0x23   : > { %962 = vmatpush1.bf16.msra.mxu0 %v1705_v11  ;;  %v1447_v1 = vcombine.high %v278_v63, %v278_v63  ;;  %v1749_v2 = vld [vmem:[%s2468_s1 + $0x224] ss:$8 sps:$4 sm:$0xff]   ;;  %v1747_v5 = vld [vmem:[%s2468_s1 + $0x220] ss:$8 sps:$4 sm:$0xff]   ;;  %v1755_v6 = vld [vmem:[%s2468_s1 + $0x234] ss:$8 sps:$4 sm:$0xff]   ;;  %v1446_v23 = vcombine.low %v278_v63, %v278_v63 }
  0x24   : > { %963 = vmatprep.subr.bf16.mxu0 %v1706_v12  ;;  %919 = vmatpush1.bf16.msra.mxu1 %v1774_v34  ;;  %v1817_v4 = vld [vmem:[%s2468_s1 + $0xc4] ss:$8 sps:$4 sm:$0xff]   ;;  %v1753_v7 = vld [vmem:[%s2468_s1 + $0x230] ss:$8 sps:$4 sm:$0xff]   ;;  %v1822_v8 = vld [vmem:[%s2468_s1 + $0xc0] ss:$8 sps:$4 sm:$0xff]  }
  0x25   : > { %920 = vmatprep.subr.bf16.mxu1 %v1775_v35  ;;  %942 = vmatprep.mubr.bf16.mxu1 %v1447_v1  ;;  %v1823_v9 = vld [vmem:[%s2468_s1 + $0xd4] ss:$8 sps:$4 sm:$0xff]   ;;  %v1761_v10 = vld [vmem:[%s2468_s1 + $0x244] ss:$8 sps:$4 sm:$0xff]   ;;  %v1828_v11 = vld [vmem:[%s2468_s1 + $0xd0] ss:$8 sps:$4 sm:$0xff]  }
  0x26   : > { %v1759_v12 = vld [vmem:[%s2468_s1 + $0x240] ss:$8 sps:$4 sm:$0xff]   ;;  %v1831_v13 = vld [vmem:[%s2468_s1 + $0xe4] ss:$8 sps:$4 sm:$0xff]   ;;  %v1767_v14 = vld [vmem:[%s2468_s1 + $0x254] ss:$8 sps:$4 sm:$0xff]  }
  0x27   : > { %964 = vmatpush1.bf16.msra.mxu0 %v1708_v15  ;;  %v1836_v15 = vld [vmem:[%s2468_s1 + $0xe0] ss:$8 sps:$4 sm:$0xff]   ;;  %v1765_v17 = vld [vmem:[%s2468_s1 + $0x250] ss:$8 sps:$4 sm:$0xff]   ;;  %v1785_v27 = vld [vmem:[%s2468_s1 + $0x284] ss:$8 sps:$4 sm:$0xff]  }
  0x28   : > { %965 = vmatprep.subr.bf16.mxu0 %v1709_v16  ;;  %921 = vmatpush1.bf16.msra.mxu1 %v1780_v38  ;;  %v1837_v16 = vld [vmem:[%s2468_s1 + $0xf4] ss:$8 sps:$4 sm:$0xff]   ;;  %v1842_v20 = vld [vmem:[%s2470_s3 + $0x40] sm:$0xff]   ;;  %v1777_v26 = vld [vmem:[%s2468_s1 + $0x270] ss:$8 sps:$4 sm:$0xff]   ;;  %s1381_s20 = sshll.u32 %s271_s19, 4  ;;  %s2427_s20 = int_to_ptr.vmem [resolvable:$true] %s1381_s20 }
  0x29   : > { %922 = vmatprep.subr.bf16.mxu1 %v1781_v39  ;;  %v1771_v21 = vld [vmem:[%s2468_s1 + $0x260] ss:$8 sps:$4 sm:$0xff]   ;;  %v1791_v31 = vld [vmem:[%s2468_s1 + $0x294] ss:$8 sps:$4 sm:$0xff]   ;;  %v1789_v34 = vld [vmem:[%s2468_s1 + $0x290] ss:$8 sps:$4 sm:$0xff]  }
  0x2a   : > { %v1843_v24 = vld [vmem:[%s2470_s3] sm:$0xff]   ;;  %v1803_v39 = vld [vmem:[%s2468_s1 + $0x2b4] ss:$8 sps:$4 sm:$0xff]   ;;  %s1368_s29 = scalar_lea.sflag [#allocation3], %s269_s15  ;;  %s1933_s9 = smov [#allocation2]  }
  0x2b   : > { %966 = vmatpush1.bf16.msra.mxu0 %v1711_v18  ;;  %v1773_v18 = vld [vmem:[%s2468_s1 + $0x264] ss:$8 sps:$4 sm:$0xff]   ;;  %v1783_v30 = vld [vmem:[%s2468_s1 + $0x280] ss:$8 sps:$4 sm:$0xff]   ;;  %s1870_s14 = sshll.u32 %s1933_s9, 4  ;;  %s1871_s14 = int_to_ptr.vmem [resolvable:$false] %s1870_s14 }
  0x2c   : > { %967 = vmatprep.subr.bf16.mxu0 %v1712_v19  ;;  %923 = vmatpush1.bf16.msra.mxu1 %v1786_v42  ;;  %v1839_v19 = vld [vmem:[%s2468_s1 + $0xf0] ss:$8 sps:$4 sm:$0xff]   ;;  %v1797_v35 = vld [vmem:[%s2468_s1 + $0x2a4] ss:$8 sps:$4 sm:$0xff]   ;;  %v1795_v38 = vld [vmem:[%s2468_s1 + $0x2a0] ss:$8 sps:$4 sm:$0xff]   ;;  %p1873_p0 = scmp.lt.s32.totalorder %s2427_s20, %s1871_s14 }
  0x2d   : > { %924 = vmatprep.subr.bf16.mxu1 %v1787_v43  ;;  %v1809_v42 = vld [vmem:[%s2468_s1 + $0x2c4] ss:$8 sps:$4 sm:$0xff]   ;;  %v1807_v43 = vld [vmem:[%s2468_s1 + $0x2c0] ss:$8 sps:$4 sm:$0xff]   ;;  %s1872_s13 = scalar_lea.vmem %s1871_s14, 256 }
  0x2f   : > { %968 = vmatpush1.bf16.msra.mxu0 %v1714_v22  ;;  %v1779_v22 = vld [vmem:[%s2468_s1 + $0x274] ss:$8 sps:$4 sm:$0xff]  }
  0x30   : > { %969 = vmatprep.subr.bf16.mxu0 %v1715_v25  ;;  %925 = vmatpush1.bf16.msra.mxu1 %v1792_v46  ;;  %v1844_v25 = vld [vmem:[%s2470_s3 + $0x48] sm:$0xff]  }
  0x31   : > { %926 = vmatprep.subr.bf16.mxu1 %v1793_v47  ;;  %v1821_v46 = vld [vmem:[%s2468_s1 + $0x2e4] ss:$8 sps:$4 sm:$0xff]   ;;  %v1819_v47 = vld [vmem:[%s2468_s1 + $0x2e0] ss:$8 sps:$4 sm:$0xff]  }
  0x33   : > { %970 = vmatpush1.bf16.msra.mxu0 %v1717_v28  ;;  %v1845_v28 = vld [vmem:[%s2470_s3 + $0x8] sm:$0xff]  }
  0x34   : > { %971 = vmatprep.subr.bf16.mxu0 %v1718_v29  ;;  %927 = vmatpush1.bf16.msra.mxu1 %v1798_v50  ;;  %v1846_v29 = vld [vmem:[%s2470_s3 + $0x50] sm:$0xff]   ;;  %v1835_v50 = vld [vmem:[%s2468_s1 + $0x304] ss:$8 sps:$4 sm:$0xff]  }
  0x35   : > { %928 = vmatprep.subr.bf16.mxu1 %v1799_v51  ;;  %v1450_v51 = vcombine.low %v2199_v57, %v2199_v57  ;;  %v1854_v57 = vld [vmem:[%s2470_s3 + $0x70] sm:$0xff]  }
  0x37   : > { %972 = vmatpush1.bf16.msra.mxu0 %v1720_v32  ;;  %v1847_v32 = vld [vmem:[%s2470_s3 + $0x10] sm:$0xff]  }
  0x38   : > { %973 = vmatprep.subr.bf16.mxu0 %v1721_v33  ;;  %929 = vmatpush1.bf16.msra.mxu1 %v1804_v54  ;;  %v1848_v33 = vld [vmem:[%s2470_s3 + $0x58] sm:$0xff]  }
  0x39   : > { %930 = vmatprep.subr.bf16.mxu1 %v1805_v56  ;;  %v1738_v54 = vld [vmem:[%s2060_s8 + $0x18] ss:$0 sps:$4 sm:$0xff]   ;;  %v1853_v56 = vld [vmem:[%s2470_s3 + $0x28] sm:$0xff]   ;;  %s1579_s8 = sshll.u32 %s1995_s28, 7  ;;  %s1866_s28 = scalar_lea.vmem %s2427_s20, 128 }
  0x3a   : > { %s2425_s23 = scalar_lea.hbm %s2474_s7, %s1579_s8  ;;  %p1867_p11 = scmp.ne.s32.totalorder %s2427_s20, %s1866_s28 }
  0x3b   : > { %974 = vmatpush1.bf16.msra.mxu0 %v1723_v36  ;;  %v1849_v36 = vld [vmem:[%s2470_s3 + $0x18] sm:$0xff]   ;;  %p1874_p1 = scmp.lt.s32.totalorder %s1872_s13, %s1866_s28 }
  0x3c   : > { %975 = vmatprep.subr.bf16.mxu0 %v1724_v37  ;;  %931 = vmatpush1.bf16.msra.mxu1 %v1810_v61  ;;  %v1850_v37 = vld [vmem:[%s2470_s3 + $0x60] sm:$0xff]   ;;  %v1931_v61 = vmov 0.0   ;;  %p1868_p12 = pnand %p1867_p11, %p2012_p5 }
  0x3d   : > { %932 = vmatprep.subr.bf16.mxu1 %v1811_v62  ;;  %p1875_p2 = por %p1874_p1, %p1873_p0 }
  0x3e   : > { %p1869_p13 = pneg %p1868_p12 }
  0x3f   : > { %976 = vmatpush1.bf16.msra.mxu0 %v1726_v40  ;;  %v1851_v40 = vld [vmem:[%s2470_s3 + $0x20] sm:$0xff]  }
  0x40   : > { %977 = vmatprep.subr.bf16.mxu0 %v1727_v41  ;;  %933 = vmatpush1.bf16.msra.mxu1 %v1816_v3  ;;  %v1801_v41 = vld [vmem:[%s2468_s1 + $0x2b0] ss:$8 sps:$4 sm:$0xff]   ;;  %p1876_p3 = pnand %p1875_p2, %p1869_p13 }
  0x41   : > { %934 = vmatprep.subr.bf16.mxu1 %v1817_v4 }
  0x43   : > { %978 = vmatpush1.bf16.msra.mxu0 %v1729_v44  ;;  %v1815_v44 = vld [vmem:[%s2468_s1 + $0x2d4] ss:$8 sps:$4 sm:$0xff]  }
  0x44   : > { %979 = vmatprep.subr.bf16.mxu0 %v1730_v45  ;;  %935 = vmatpush1.bf16.msra.mxu1 %v1822_v8  ;;  %v1813_v45 = vld [vmem:[%s2468_s1 + $0x2d0] ss:$8 sps:$4 sm:$0xff]  }
  0x45   : > { %936 = vmatprep.subr.bf16.mxu1 %v1823_v9 }
  0x47   : > { %980 = vmatpush1.bf16.msra.mxu0 %v1732_v48  ;;  %v1827_v48 = vld [vmem:[%s2468_s1 + $0x2f4] ss:$8 sps:$4 sm:$0xff]  }
  0x48   : > { %981 = vmatprep.subr.bf16.mxu0 %v1733_v49  ;;  %937 = vmatpush1.bf16.msra.mxu1 %v1828_v11  ;;  %v1825_v49 = vld [vmem:[%s2468_s1 + $0x2f0] ss:$8 sps:$4 sm:$0xff]  }
  0x49   : > { %938 = vmatprep.subr.bf16.mxu1 %v1831_v13 }
  0x4b   : > { %982 = vmatpush1.bf16.msra.mxu0 %v1735_v52  ;;  %v1833_v52 = vld [vmem:[%s2468_s1 + $0x300] ss:$8 sps:$4 sm:$0xff]  }
  0x4c   : > { %992 = vmatprep.subr.bf16.mxu0 %v1741_v53  ;;  %939 = vmatpush1.bf16.msra.mxu1 %v1836_v15  ;;  %v1930_v53 = vmov 0  }
  0x4d   : > { %940 = vmatprep.subr.bf16.mxu1 %v1837_v16 }
  0x4e   : > { %984 = vmatmul.mubr.bf16.vlgmr.msra.gmra.mrb[0].mxu0 %v1448_v55  ;;  %v1852_v55 = vld [vmem:[%s2470_s3 + $0x68] sm:$0xff]  }
  0x4f   : > { %993 = vmatpush1.bf16.msra.mxu0 %v1739_v58  ;;  %1024 = vmatprep.mubr.bf16.mxu0 %v1451_v59  ;;  %v1855_v58 = vld [vmem:[%s2470_s3 + $0x30] sm:$0xff]   ;;  %v1856_v59 = vld [vmem:[%s2470_s3 + $0x78] sm:$0xff]  }
  0x50   : > { %994 = vmatprep.subr.bf16.mxu0 %v1744_v60  ;;  %941 = vmatpush1.bf16.msra.mxu1 %v1839_v19  ;;  %v1857_v60 = vld [vmem:[%s2470_s3 + $0x38] sm:$0xff]  }
  0x51   : > { %1582 = vmatprep.subr.bf16.mxu1 %v1842_v20  ;;  %v1858_v20 = vld [vmem:[%s2472_s5] sm:$0xff]  }
  0x53   : > { %995 = vmatpush1.bf16.msra.mxu0 %v1742_v0  ;;  %943 = vmatmul.mubr.bf16.vlgmr.msra.gmra.mrb[0].mxu1 %v1446_v23  ;;  %v1860_v23 = vld [vmem:[%s2472_s5 + $0x10] sm:$0xff]  }
  0x54   : > { %996 = vmatprep.subr.bf16.mxu0 %v1749_v2  ;;  %1583 = vmatpush3.bf16.msra.mxu1 %v1843_v24  ;;  %v382_v2 = vlaneseq  ;;  %v1861_v24 = vld [vmem:[%s2472_s5 + $0x18] sm:$0xff]  }
  0x55   : > { %1584 = vmatprep.subr.bf16.mxu1 %v1844_v25  ;;  %v1862_v25 = vld [vmem:[%s2472_s5 + $0x20] sm:$0xff]  }
  0x56   : > { %v383_v3 = vshrl.u32 %v382_v2, 7 }
  0x57   : > { %997 = vmatpush1.bf16.msra.mxu0 %v1747_v5  ;;  %v380_v5 = vld [vmem:[%s2469_s2] sm:$0x3] }
  0x58   : > { %998 = vmatprep.subr.bf16.mxu0 %v1755_v6  ;;  %1585 = vmatpush3.bf16.msra.mxu1 %v1845_v28  ;;  %v384_v4 = vsub.s32 0, %v383_v3  ;;  %v388_v6 = vsub.s32 1, %v383_v3  ;;  %v1865_v28 = vld [vmem:[%s2472_s5 + $0x38] sm:$0xff]  }
  0x59   : > { %1586 = vmatprep.subr.bf16.mxu1 %v1846_v29 }
  0x5a   : > { %v389_v8 = vrot.slane %v380_v5, %v388_v6 }
  0x5b   : > { %999 = vmatpush1.bf16.msra.mxu0 %v1753_v7  ;;  %v385_v7 = vrot.slane %v380_v5, %v384_v4 }
  0x5c   : > { %1000 = vmatprep.subr.bf16.mxu0 %v1761_v10  ;;  %1587 = vmatpush3.bf16.msra.mxu1 %v1847_v32 }
  0x5d   : > { %1588 = vmatprep.subr.bf16.mxu1 %v1848_v33 }
  0x5f   : > { %1001 = vmatpush1.bf16.msra.mxu0 %v1759_v12 }
  0x60   : > { %1002 = vmatprep.subr.bf16.mxu0 %v1767_v14  ;;  %1589 = vmatpush3.bf16.msra.mxu1 %v1849_v36 }
  0x61   : > { %1590 = vmatprep.subr.bf16.mxu1 %v1850_v37 }
  0x63   : > { %1003 = vmatpush1.bf16.msra.mxu0 %v1765_v17 }
  0x64   : > { %1004 = vmatprep.subr.bf16.mxu0 %v1773_v18  ;;  %1591 = vmatpush3.bf16.msra.mxu1 %v1851_v40 }
  0x65   : > { %1592 = vmatprep.subr.bf16.mxu1 %v1852_v55 }
  0x67   : > { %1005 = vmatpush1.bf16.msra.mxu0 %v1771_v21 }
  0x68   : > { %1006 = vmatprep.subr.bf16.mxu0 %v1779_v22  ;;  %1593 = vmatpush3.bf16.msra.mxu1 %v1853_v56  ;;  %v1859_v22 = vld [vmem:[%s2472_s5 + $0x8] sm:$0xff]  }
  0x69   : > { %1594 = vmatprep.subr.bf16.mxu1 %v1854_v57 }
  0x6b   : > { %1007 = vmatpush1.bf16.msra.mxu0 %v1777_v26  ;;  %v1863_v26 = vld [vmem:[%s2472_s5 + $0x28] sm:$0xff]  }
  0x6c   : > { %1008 = vmatprep.subr.bf16.mxu0 %v1785_v27  ;;  %1595 = vmatpush3.bf16.msra.mxu1 %v1855_v58  ;;  %v1864_v27 = vld [vmem:[%s2472_s5 + $0x30] sm:$0xff]  }
  0x6d   : > { %1596 = vmatprep.subr.bf16.mxu1 %v1856_v59 }
  0x6f   : > { %1009 = vmatpush1.bf16.msra.mxu0 %v1783_v30  ;;  %v1552_v30 = vld [vmem:[%s2471_s4] ss:$0 sm:$0xff] }
  0x70   : > { %1010 = vmatprep.subr.bf16.mxu0 %v1791_v31  ;;  %1597 = vmatpush3.bf16.msra.mxu1 %v1857_v60 }
  0x71   : > { %1613 = vmatprep.subr.bf16.mxu1 %v1931_v61 }
  0x73   : > { %1011 = vmatpush1.bf16.msra.mxu0 %v1789_v34 }
  0x74   : > { %1012 = vmatprep.subr.bf16.mxu0 %v1797_v35 }
  0x77   : > { %1013 = vmatpush1.bf16.msra.mxu0 %v1795_v38  ;;  %v1569_v38 = vld [vmem:[%s2473_s6] ss:$0 sm:$0xff] }
  0x78   : > { %1014 = vmatprep.subr.bf16.mxu0 %v1803_v39 }
  0x7b   : > { %1015 = vmatpush1.bf16.msra.mxu0 %v1801_v41 }
  0x7c   : > { %1016 = vmatprep.subr.bf16.mxu0 %v1809_v42 }
  0x7f   : > { %1017 = vmatpush1.bf16.msra.mxu0 %v1807_v43 }
  0x80   : > { %1018 = vmatprep.subr.bf16.mxu0 %v1815_v44 }
  0x83   : > { %1019 = vmatpush1.bf16.msra.mxu0 %v1813_v45 }
  0x84   : > { %1020 = vmatprep.subr.bf16.mxu0 %v1821_v46 }
  0x87   : > { %1021 = vmatpush1.bf16.msra.mxu0 %v1819_v47 }
  0x88   : > { %1022 = vmatprep.subr.bf16.mxu0 %v1827_v48 }
  0x8b   : > { %1023 = vmatpush1.bf16.msra.mxu0 %v1825_v49 }
  0x8c   : > { %1033 = vmatprep.subr.bf16.mxu0 %v1835_v50 }
  0x8e   : > { %1025 = vmatmul.mubr.bf16.vlgmr.msra.gmra.mrb[0].mxu0 %v1450_v51 }
  0x8f   : > { %1034 = vmatpush1.bf16.msra.mxu0 %v1833_v52  ;;  %1065 = vmatprep.mubr.bf16.mxu0 %v1930_v53 }
  0x9a   : > { %1551 = vmatmul.mubr.msk.bf16.vlgmr.msra.gmra.mrb[0].mxu0 %vm906_vm0, %v1738_v54 }
 0x126   : > { %v944_v62 = vpop.f32.mrb[0].mxu1 }
 0x127   : > { %v946_v63 = vpop.f32.mrb[1].mxu1  ;;  %v945_v9 = vadd.f32 %v944_v62, %v385_v7 }
 0x128   : > { %v948_v0 = vpop.f32.mrb[2].mxu1  ;;  %v947_v10 = vadd.f32 %v946_v63, %v389_v8 }
 0x129   : > { %v949_v1 = vpop.f32.mrb[3].mxu1 }
 0x16d   : > { %v1067_v11 = vpop.f32.mrb[0].mxu0 }
 0x16e   : > { %v1634_v12 = vadd.f32 %v1067_v11, %v945_v9  ;;  %v1069_v13 = vpop.f32.mrb[1].mxu0 }
 0x16f   : > { %v1636_v14 = vadd.f32 %v1069_v13, %v947_v10  ;;  %v1071_v15 = vpop.f32.mrb[2].mxu0 }
 0x170   : > { %v1074_v16 = vmax.f32 %v1634_v12, 0.0  ;;  %v1072_v17 = vpop.f32.mrb[3].mxu0 }
 0x171   : > { %v1075_v18 = vmax.f32 %v1636_v14, 0.0 }
 0x172   : > { %v1076_v21 = vpack.c.bf16 %v1074_v16, %v1074_v16 }
 0x173   : > { %v1077_v19 = vpack.c.bf16 %v1075_v18, %v1075_v18 }
 0x175   : > { %1245 = vmatprep.mubr.bf16.mxu1 %v1077_v19 }
 0x176   : > { %1246 = vmatmul.mubr.bf16.vlgmr.msra.gmra.mrb[4].mxu1 %v1076_v21 }
 0x177   : > { %1614 = vmatpush3.bf16.msra.mxu1 %v1858_v20  ;;  %1629 = vmatprep.mubr.msk.bf16.mxu1 %vm1932_vm1, %v1931_v61 }
 0x178   : > { %1615 = vmatprep.subr.bf16.mxu1 %v1931_v61 }
 0x17b   : > { %1616 = vmatpush3.bf16.msra.mxu1 %v1859_v22 }
 0x17c   : > { %1617 = vmatprep.subr.bf16.mxu1 %v1931_v61 }
 0x17f   : > { %1618 = vmatpush3.bf16.msra.mxu1 %v1860_v23 }
 0x180   : > { %1619 = vmatprep.subr.bf16.mxu1 %v1931_v61 }
 0x183   : > { %1620 = vmatpush3.bf16.msra.mxu1 %v1861_v24 }
 0x184   : > { %1621 = vmatprep.subr.bf16.mxu1 %v1931_v61 }
 0x187   : > { %1622 = vmatpush3.bf16.msra.mxu1 %v1862_v25 }
 0x188   : > { %1623 = vmatprep.subr.bf16.mxu1 %v1931_v61 }
 0x18b   : > { %1624 = vmatpush3.bf16.msra.mxu1 %v1863_v26 }
 0x18c   : > { %1625 = vmatprep.subr.bf16.mxu1 %v1931_v61 }
 0x18f   : > { %1626 = vmatpush3.bf16.msra.mxu1 %v1864_v27 }
 0x190   : > { %1627 = vmatprep.subr.bf16.mxu1 %v1931_v61 }
 0x193   : > { %1628 = vmatpush3.bf16.msra.mxu1 %v1865_v28 }
 0x249   : > { %v1598_v29 = vpop.f32.mrb[4].mxu1 }
 0x24a   : > { %v1599_v31 = vpop.f32.mrb[5].mxu1 }
 0x24b   : > { %v1600_v32 = vadd.f32 %v1599_v31, %v1598_v29  ;;  %v1601_v33 = vpop.f32.mrb[6].mxu1 }
 0x24c   : > { %v1602_v34 = vpop.f32.mrb[7].mxu1 }
 0x24d   : > { %v1248_v35 = vadd.f32 %v1600_v32, %v1552_v30 }
 0x24f   : > { %v1253_v36 = vmax.f32 %v1248_v35, 0.0 }
 0x251   : > { %v1254_v37 = vpack.c.bf16 %v1253_v36, %v1253_v36 }
 0x253   : > { %1630 = vmatmul.mubr.bf16.vlgmr.msra.gmra.mrb[8].mxu1 %v1254_v37 }
 0x326   : > { %v1360_v39 = vpop.f32.mrb[8].mxu1 }
 0x327   : > { %v1361_v40 = vadd.f32 %v1569_v38, %v1360_v39  ;;  %v1631_v41 = vpop.f32.mrb[9].mxu1 }
 0x328   : > { %v1363_v42 = vpop.f32.mrb[10].mxu1 }
 0x329   : > { %1366 = vst [vmem:[%s271_s19] sm:$0xff] %v1361_v40  ;;  %v1632_v43 = vpop.f32.mrb[11].mxu1 }
 0x32a   : > { %1879 = shalt.err (!%p1876_p3)
}
 0x32b   : > { %s1880_s15 = scalar_lea.hbm %s2425_s23, 128  ;;  %s1884_s18 = scalar_lea.hbm %s2474_s7, 256 }
 0x32c   : > { %p1881_p4 = scmp.ne.s32.totalorder %s2425_s23, %s1880_s15  ;;  %p1885_p9 = scmp.lt.u32.totalorder %s2425_s23, %s2474_s7 }
 0x32d   : > { %p1886_p10 = scmp.lt.u32.totalorder %s1884_s18, %s1880_s15  ;;  %p1888_p12 = scmp.lt.u32.totalorder %s1880_s15, %s2425_s23 }
 0x32e   : > { %p1882_p7 = pnand %p1881_p4, %p2012_p5 }
 0x32f   : > { %p1887_p11 = por %p1886_p10, %p1885_p9 }
 0x330   : > { %p1883_p8 = pneg %p1882_p7 }
 0x331   : > { %p1889_p13 = por %p1888_p12, %p1887_p11 }
 0x333   : > { %p1890_p0 = pnand %p1889_p13, %p1883_p8 }
 0x335   : > { %1893 = shalt.err (!%p1890_p0)
}
 0x336   : > { %1646 = dma.vmem_to_hbm [thread:$0]  (%p2012_p5), %s2427_s20, 128, %s2425_s23, %s1368_s29  }
 0x337 PF: > { %p1652_p1 = scmp.ge.s32.totalorder %s1928_s27, 2  ;;  %s1393_s21 = sand.u32 1, %s1916_s24  }
 0x338   : > { %s1394_s22 = scalar_lea.sflag [#allocation3], %s1393_s21 }
 0x339   : > { %p1649_p2 = pnand %p1652_p1, %p2016_p6 }
 0x33b   : > { %1911 = dma.done.wait (!%p1649_p2), %s1394_s22, 128  }
 0x33c   : > { %1913 = vsyncadd (!%p1649_p2), %s1394_s22, 4294967168  ;;  %p17_p3 = scmp.ge.s32.totalorder %s1999_s30, 4   ;;  %s2477_s24 = smov %s1920_s25 }
 0x33d   : > { %s2478_s25 = smov %s1924_s26  ;;  %s2479_s26 = smov %s2010_s10 }
 0x33e   : > { %s2480_s27 = smov %s1999_s30  ;;  %19 = sbr.rel (!%p17_p3) target bundleno = 3 (0x3), region = 83 }
 0x345   :  { %1399 = vsyncpa [#allocation3], 1 }
 0x346   :  { %1401 = vsyncpa [#allocation3 + $0x1], 1 }

</bundles_post_ra>
